<compile_context>
chip_gen: v7x
topology: tpu7x:2x2x1
jax: 0.10.0
libtpu: 0.0.40
codegen_flags: <defaults>
</compile_context>

<pallas_src>
import functools

import jax
import jax.numpy as jnp
from jax.experimental import pallas as pl
from jax.experimental.pallas import tpu as pltpu


def _round_up(x: int, m: int) -> int:
    return ((x + m - 1) // m) * m


def _critic_tab_kernel(state_ref, mask_ref, v_ref, out_ref, *, n_fluents, num_chunks, chunk):
    """One grid step: out[b] += sum_{s in this S tile} v[s] * (score[b,s] == F).

    state_ref: (TB, F)    bf16, rows are (2*state-1) in {-1,+1}; zero rows are B padding.
    mask_ref : (F, TS)    bf16, columns are mask rows in {-1,+1}; zero columns are S padding.
    v_ref    : (1, TS)    f32, zero padded.
    out_ref  : (1, TB, 1) f32, resident across the S (reduction) grid axis.
    """
    @pl.when(pl.program_id(2) == 0)
    def _():
        out_ref[...] = jnp.zeros_like(out_ref)

    state = state_ref[...]                                    # (TB, F)
    acc = jnp.zeros((state.shape[0], 1), jnp.float32)
    target = jnp.float32(n_fluents)
    for c in range(num_chunks):                               # static, num_chunks <= 8
        m_c = mask_ref[:, pl.ds(c * chunk, chunk)]            # (F, chunk) bf16
        v_c = v_ref[:, pl.ds(c * chunk, chunk)]               # (1, chunk) f32
        # score is an integer in [-F, F] accumulated in f32 on the MXU -> exact compare.
        score = jnp.dot(state, m_c, preferred_element_type=jnp.float32)   # (TB, chunk)
        acc = acc + jnp.sum(jnp.where(score == target, v_c, 0.0),
                            axis=-1, keepdims=True)           # VPU select + XLU lane reduce
    out_ref[...] += acc[None, :, :]


def make_critic_tab_forward(mask, v, *, max_batch: int = 128):
    """mask: (S, F) int in {-1,+1}; v: (S,) f32. Returns forward(state (B,F) in {0,1}) -> (B,) f32."""
    S, F = mask.shape
    assert F >= 1, "CriticTab kernel requires at least one fluent"
    assert v.shape == (S,)

    # ---- tile selection --------------------------------------------------------------
    # Batch tile (sublanes of the score / rows of the output).
    B_cap = _round_up(max(int(max_batch), 1), 8)
    TB = min(B_cap, 128)

    # Compute chunk along the S lane axis: keep the (TB, TC) f32 score within ~half the
    # 256 KiB vreg file so the compare/select never spills to VMEM.
    TC = max(128, min(2048, ((128 * 1024) // (4 * TB)) // 128 * 128))
    S_pad = _round_up(max(S, 1), 128)
    TC = min(TC, S_pad)
    S_pad = _round_up(S_pad, TC)

    # DMA tile: a multiple of TC, sized so the (F, TS) bf16 mask tile is <= ~2 MiB and at
    # most 8 compute chunks, to amortize per-grid-step overhead while staying well inside
    # the default scoped-VMEM limit (double-buffered mask tile <= ~4 MiB).
    budget_chunks = max(1, (2 * 1024 * 1024) // (2 * F * TC))
    TS = TC * max(1, min(budget_chunks, 8192 // TC, 8))
    TS = min(TS, S_pad)
    num_chunks = TS // TC

    # S-split across P parallel grid entries so both v7x TensorCores get work even when the
    # batch fits in a single tile (pure loop-splitting on v5e/v6e).
    P = 2 if pl.cdiv(S_pad, TS) >= 2 else 1
    S_pad = _round_up(S_pad, P * TS)
    SP = S_pad // (P * TS)            # S grid steps per parallel part

    # ---- one-time module-state prep (hoisted out of the per-call path) ----------------
    mask_t = jnp.zeros((F, S_pad), jnp.bfloat16).at[:, :S].set(
        jnp.asarray(mask).astype(jnp.bfloat16).T)
    v_row = jnp.zeros((1, S_pad), jnp.float32).at[0, :S].set(
        jnp.asarray(v).astype(jnp.float32))

    kernel = functools.partial(_critic_tab_kernel, n_fluents=F,
                               num_chunks=num_chunks, chunk=TC)

    def _fwd(state, mask_t, v_row):
        B = state.shape[0]
        B_pad = _round_up(max(B, 1), TB)
        # {0,1} -> {-1,+1}; padded rows stay zero (score 0 != F, and they are sliced off).
        state_pm = (2 * state - 1).astype(jnp.bfloat16)
        state_p = jnp.zeros((B_pad, F), jnp.bfloat16).at[:B, :].set(state_pm)

        out = pl.pallas_call(
            kernel,
            out_shape=jax.ShapeDtypeStruct((P, B_pad, 1), jnp.float32),
            grid_spec=pltpu.PrefetchScalarGridSpec(
                num_scalar_prefetch=0,
                grid=(P, B_pad // TB, SP),
                in_specs=[
                    pl.BlockSpec((TB, F), lambda p, b, s: (b, 0)),           # (2*state-1)
                    pl.BlockSpec((F, TS), lambda p, b, s: (0, p * SP + s)),  # mask^T tile
                    pl.BlockSpec((1, TS), lambda p, b, s: (0, p * SP + s)),  # v tile
                ],
                out_specs=pl.BlockSpec((1, TB, 1), lambda p, b, s: (p, b, 0)),
            ),
            compiler_params=pltpu.CompilerParams(
                dimension_semantics=("parallel", "parallel", "arbitrary"),
            ),
        )(state_p, mask_t, v_row)

        # Sum the P partial reductions and drop batch padding.
        return jnp.sum(out[:, :B, 0], axis=0)

    fwd = jax.jit(_fwd)
    return lambda state: fwd(state, mask_t, v_row)


def _reference(mask, state, v):
    # Pure-JAX transcription of the torch forward, vectorized over the batch.
    m = mask.astype(jnp.float32)
    s = state.astype(jnp.float32)
    mp = jnp.maximum(m, 0.0)
    mn = jnp.minimum(m, 0.0)
    ms = 1.0 - mp[None] * (1.0 - s[:, None, :]) + mn[None] * s[:, None, :]
    return jnp.sum(jnp.prod(ms, axis=-1) * v[None, :], axis=-1)


def _all_states_mask(n_fluents):
    # env.all_states analogue: every binary valuation over n_fluents fluents, as {-1,+1}.
    idx = jnp.arange(2 ** n_fluents, dtype=jnp.int32)
    bits = ((idx[:, None] >> jnp.arange(n_fluents, dtype=jnp.int32)[None, :]) & 1).astype(jnp.int32)
    return 2 * bits - 1


if __name__ == "__main__":
    key = jax.random.PRNGKey(0)

    # Case 1: module-sized toy shapes (F=4 fluents -> S=16 tabulated states, batch=2).
    # Case 2: larger table exercising the chunked score loop and the P=2 S-split.
    for F, B in ((4, 2), (12, 3)):
        S = 2 ** F
        mask = _all_states_mask(F)                                     # (S, F) in {-1,+1}
        key, k_v, k_s = jax.random.split(key, 3)
        # The module initializes v to zeros; small random values make the check non-trivial.
        v = jax.random.normal(k_v, (S,), dtype=jnp.float32) * 0.1
        state = jax.random.bernoulli(k_s, 0.5, (B, F)).astype(jnp.int32)

        forward = make_critic_tab_forward(mask, v)
        out = jax.block_until_ready(forward(state))
        ref = _reference(mask, state, v)

        assert out.shape == (B,), (out.shape, B)
        assert out.dtype == jnp.float32
        assert jnp.allclose(out, ref, atol=1e-6), (F, B, out, ref)

    # TODO(synk): if env.all_states is guaranteed to enumerate all 2^F valuations in sorted
    # order, out[b] = v[sum_f state[b,f]*2^f] (a gather) removes the S dimension entirely;
    # the general matmul form is kept since that guarantee is not part of the module.
    print("KERNEL_OK")
</pallas_src>

<mosaic_0001>
module attributes {stable_mosaic.version = 11 : i64} {
  func.func @_critic_tab_kernel(%arg0: i32, %arg1: i32, %arg2: i32, %arg3: memref<128x4xbf16, #tpu.memory_space<vmem>>, %arg4: memref<4x128xbf16, #tpu.memory_space<vmem>>, %arg5: memref<1x128xf32, #tpu.memory_space<vmem>>, %arg6: memref<1x128x1xf32, #tpu.memory_space<vmem>>) attributes {dimension_semantics = [#tpu.dimension_semantics<parallel>, #tpu.dimension_semantics<parallel>, #tpu.dimension_semantics<arbitrary>], iteration_bounds = array<i64: 1, 1, 1>, scalar_prefetch = 0 : i64, scratch_operands = 0 : i64, tpu.core_type = #tpu.core_type<tc>, window_params = [{transform_indices = @transform_0, window_bounds = array<i64: 128, 4>}, {transform_indices = @transform_1, window_bounds = array<i64: 4, 128>}, {transform_indices = @transform_2, window_bounds = array<i64: 1, 128>}, {transform_indices = @transform_3, window_bounds = array<i64: 1, 128, 1>}]} {
    %c0_i32 = arith.constant 0 : i32
    %0 = arith.cmpi eq, %arg2, %c0_i32 : i32
    %1 = arith.extui %0 : i1 to i32
    %c0_i32_0 = arith.constant 0 : i32
    %2 = arith.cmpi ne, %1, %c0_i32_0 : i32
    scf.if %2 {
      %cst_16 = arith.constant 0.000000e+00 : f32
      %21 = vector.broadcast %cst_16 : f32 to vector<1x128x1xf32>
      %c0_17 = arith.constant 0 : index
      %c0_18 = arith.constant 0 : index
      %c0_19 = arith.constant 0 : index
      %22 = vector.load %arg6[%c0_17, %c0_18, %c0_19] : memref<1x128x1xf32, #tpu.memory_space<vmem>>, vector<1x128x1xf32>
      tpu.vector_store %arg6[%c0_17, %c0_18, %c0_19], %21 {strides = array<i32>} : memref<1x128x1xf32, #tpu.memory_space<vmem>>, vector<1x128x1xf32>,
    } else {
    }
    %c0 = arith.constant 0 : index
    %c0_1 = arith.constant 0 : index
    %3 = vector.load %arg3[%c0, %c0_1] : memref<128x4xbf16, #tpu.memory_space<vmem>>, vector<128x4xbf16>
    %cst = arith.constant 0.000000e+00 : f32
    %4 = vector.broadcast %cst : f32 to vector<128x1xf32>
    %c0_2 = arith.constant 0 : index
    %c0_3 = arith.constant 0 : index
    %5 = vector.load %arg4[%c0_2, %c0_3] : memref<4x128xbf16, #tpu.memory_space<vmem>>, vector<4x128xbf16>
    %c0_4 = arith.constant 0 : index
    %c0_5 = arith.constant 0 : index
    %6 = vector.load %arg5[%c0_4, %c0_5] : memref<1x128xf32, #tpu.memory_space<vmem>>, vector<1x128xf32>
    %cst_6 = arith.constant dense<0.000000e+00> : vector<128x128xf32>
    %7 = tpu.matmul %3, %5, %cst_6 {dimension_numbers = #tpu.dot_dimension_numbers<[1], [0], [0], [1], [0, 0, 1, 1], [], []>} : vector<128x4xbf16>, vector<4x128xbf16>, vector<128x128xf32> -> vector<128x128xf32>
    %cst_7 = arith.constant 4.000000e+00 : f32
    %8 = vector.broadcast %cst_7 : f32 to vector<128x128xf32>
    %9 = arith.cmpf oeq, %7, %8 : vector<128x128xf32>
    %cst_8 = arith.constant 0.000000e+00 : f32
    %10 = vector.shape_cast %6 : vector<1x128xf32> to vector<1x128xf32>
    %11 = vector.broadcast %10 : vector<1x128xf32> to vector<128x128xf32>
    %12 = vector.broadcast %cst_8 : f32 to vector<128x128xf32>
    %13 = arith.select %9, %11, %12 : vector<128x128xi1>, vector<128x128xf32>
    %cst_9 = arith.constant dense<0.000000e+00> : vector<128xf32>
    %14 = vector.multi_reduction <add>, %13, %cst_9 [1] : vector<128x128xf32> to vector<128xf32>
    %15 = vector.shape_cast %14 : vector<128xf32> to vector<128x1xf32>
    %16 = arith.addf %4, %15 : vector<128x1xf32>
    %c0_10 = arith.constant 0 : index
    %c0_11 = arith.constant 0 : index
    %c0_12 = arith.constant 0 : index
    %17 = vector.load %arg6[%c0_10, %c0_11, %c0_12] : memref<1x128x1xf32, #tpu.memory_space<vmem>>, vector<1x128x1xf32>
    %18 = vector.shape_cast %16 : vector<128x1xf32> to vector<1x128x1xf32>
    %19 = arith.addf %17, %18 : vector<1x128x1xf32>
    %c0_13 = arith.constant 0 : index
    %c0_14 = arith.constant 0 : index
    %c0_15 = arith.constant 0 : index
    %20 = vector.load %arg6[%c0_13, %c0_14, %c0_15] : memref<1x128x1xf32, #tpu.memory_space<vmem>>, vector<1x128x1xf32>
    tpu.vector_store %arg6[%c0_13, %c0_14, %c0_15], %19 {strides = array<i32>} : memref<1x128x1xf32, #tpu.memory_space<vmem>>, vector<1x128x1xf32>,
    return
  }
  func.func @transform_0(%arg0: i32, %arg1: i32, %arg2: i32) -> (i32, i32) {
    %c0_i32 = arith.constant 0 : i32
    %c0_i32_0 = arith.constant 0 : i32
    return %arg1, %c0_i32 : i32, i32
  }
  func.func @transform_1(%arg0: i32, %arg1: i32, %arg2: i32) -> (i32, i32) {
    %c1_i32 = arith.constant 1 : i32
    %0 = arith.muli %arg0, %c1_i32 : i32
    %1 = arith.addi %0, %arg2 : i32
    %c0_i32 = arith.constant 0 : i32
    %c0_i32_0 = arith.constant 0 : i32
    return %c0_i32, %1 : i32, i32
  }
  func.func @transform_2(%arg0: i32, %arg1: i32, %arg2: i32) -> (i32, i32) {
    %c1_i32 = arith.constant 1 : i32
    %0 = arith.muli %arg0, %c1_i32 : i32
    %1 = arith.addi %0, %arg2 : i32
    %c0_i32 = arith.constant 0 : i32
    %c0_i32_0 = arith.constant 0 : i32
    return %c0_i32, %1 : i32, i32
  }
  func.func @transform_3(%arg0: i32, %arg1: i32, %arg2: i32) -> (i32, i32, i32) {
    %c0_i32 = arith.constant 0 : i32
    %c0_i32_0 = arith.constant 0 : i32
    return %arg0, %arg1, %c0_i32 : i32, i32, i32
  }
}

</mosaic_0001>

<bundles_post_ra>
// kernel: _fwd.1
= control target key start
LH: loop header
LB: loop body
LE: loop exit
PB: predicated region body
PF: predicated region fallthrough
CT: control target
= control target key end

     0   :  { %vm150_vm0 = vcmask 1041408   ;;  %vm125_vm1 = vcmask 31744   ;;  %vm50_vm2 = vcmask 7168   ;;  %v456_v10 = vmov 0.0   ;;  %s691_s1 = inlined_call_operand.vmem [shape: bf16[4,128], index: 1, kind: input, shape index: {}]   ;;  %s692_s0 = inlined_call_operand.vmem [shape: bf16[128,4], index: 0, kind: input, shape index: {}]   ;;  %s693_s3 = inlined_call_operand.vmem [shape: f32[1,128,1], index: 3, kind: output, shape index: {}]   ;;  %s694_s2 = inlined_call_operand.vmem [shape: f32[1,128], index: 2, kind: input, shape index: {}]  }
   0x1   :  { %v83_v0 = vld [vmem:[%s691_s1] sm:$0x3]  ;;  %v450_v4 = vld [vmem:[%s692_s0 + $0x8] sm:$0xff]   ;;  %v452_v6 = vld [vmem:[%s692_s0 + $0x10] sm:$0xff]   ;;  %61 = vst.msk [vmem:[%s693_s3 + $0x50] sm:$0xff] %vm50_vm2, %v456_v10 }
   0x2   :  { %445 = vmatprep.subr.msk.bf16.mxu0 %vm150_vm0, %v83_v0  ;;  %446 = vmatprep.subr.msk.bf16.mxu1 %vm150_vm0, %v83_v0  ;;  %v152_v1 = vsel %vm150_vm0, %v83_v0, 0  ;;  %v448_v2 = vld [vmem:[%s692_s0] sm:$0xff]   ;;  %v451_v5 = vld [vmem:[%s692_s0 + $0x28] sm:$0xff]   ;;  %v454_v7 = vld [vmem:[%s692_s0 + $0x30] sm:$0xff]   ;;  %51 = vst.msk [vmem:[%s693_s3] sm:$0xff] %vm50_vm2, %v456_v10 }
   0x3   :  { %426 = vmatpush3.bf16.msra.mxu0 %v152_v1  ;;  %444 = vmatpush3.bf16.msra.mxu1 %v152_v1  ;;  %v449_v3 = vld [vmem:[%s692_s0 + $0x20] sm:$0xff]   ;;  %v453_v8 = vld [vmem:[%s692_s0 + $0x18] sm:$0xff]   ;;  %52 = vst.msk [vmem:[%s693_s3 + $0x8] sm:$0xff] %vm50_vm2, %v456_v10  ;;  %53 = vst.msk [vmem:[%s693_s3 + $0x10] sm:$0xff] %vm50_vm2, %v456_v10 }
   0x4   :  { %427 = vmatprep.mubr.msk.bf16.mxu0 %vm125_vm1, %v448_v2  ;;  %435 = vmatprep.mubr.msk.bf16.mxu1 %vm125_vm1, %v449_v3  ;;  %v455_v9 = vld [vmem:[%s692_s0 + $0x38] sm:$0xff]   ;;  %54 = vst.msk [vmem:[%s693_s3 + $0x18] sm:$0xff] %vm50_vm2, %v456_v10  ;;  %55 = vst.msk [vmem:[%s693_s3 + $0x20] sm:$0xff] %vm50_vm2, %v456_v10  ;;  %v415_v11 = vld [vmem:[%s694_s2] ss:$0 sm:$0xff] }
   0x5   :  { %56 = vst.msk [vmem:[%s693_s3 + $0x28] sm:$0xff] %vm50_vm2, %v456_v10  ;;  %57 = vst.msk [vmem:[%s693_s3 + $0x30] sm:$0xff] %vm50_vm2, %v456_v10 }
   0x6   :  { %428 = vmatmul.mubr.msk.bf16.vlgmr.msra.gmra.mrb[0].mxu0 %vm125_vm1, %v450_v4  ;;  %436 = vmatmul.mubr.msk.bf16.vlgmr.msra.gmra.mrb[0].mxu1 %vm125_vm1, %v451_v5  ;;  %58 = vst.msk [vmem:[%s693_s3 + $0x38] sm:$0xff] %vm50_vm2, %v456_v10  ;;  %59 = vst.msk [vmem:[%s693_s3 + $0x40] sm:$0xff] %vm50_vm2, %v456_v10 }
   0x7   :  { %431 = vmatprep.mubr.msk.bf16.mxu0 %vm125_vm1, %v452_v6  ;;  %439 = vmatprep.mubr.msk.bf16.mxu1 %vm125_vm1, %v454_v7  ;;  %60 = vst.msk [vmem:[%s693_s3 + $0x48] sm:$0xff] %vm50_vm2, %v456_v10  ;;  %62 = vst.msk [vmem:[%s693_s3 + $0x58] sm:$0xff] %vm50_vm2, %v456_v10 }
   0x8   :  { %63 = vst.msk [vmem:[%s693_s3 + $0x60] sm:$0xff] %vm50_vm2, %v456_v10  ;;  %64 = vst.msk [vmem:[%s693_s3 + $0x68] sm:$0xff] %vm50_vm2, %v456_v10  ;;  %v347_v45 = vld [vmem:[%s693_s3 + $0x50] sm:$0xff] }
   0x9   :  { %65 = vst.msk [vmem:[%s693_s3 + $0x70] sm:$0xff] %vm50_vm2, %v456_v10  ;;  %66 = vst.msk [vmem:[%s693_s3 + $0x78] sm:$0xff] %vm50_vm2, %v456_v10  ;;  %v337_v51 = vld [vmem:[%s693_s3] sm:$0xff] }
   0xa   :  { %v339_v44 = vld [vmem:[%s693_s3 + $0x10] sm:$0xff]  ;;  %v338_v63 = vld [vmem:[%s693_s3 + $0x8] sm:$0xff] }
   0xb   :  { %v340_v50 = vld [vmem:[%s693_s3 + $0x18] sm:$0xff] }
   0xc   :  { %v343_v5 = vld [vmem:[%s693_s3 + $0x30] sm:$0xff]  ;;  %v342_v10 = vld [vmem:[%s693_s3 + $0x28] sm:$0xff] }
   0xd   :  { %v345_v57 = vld [vmem:[%s693_s3 + $0x40] sm:$0xff]  ;;  %v344_v4 = vld [vmem:[%s693_s3 + $0x38] sm:$0xff] }
   0xe   :  { %432 = vmatmul.mubr.msk.bf16.gmra.mrb[4].mxu0 %vm125_vm1, %v453_v8  ;;  %440 = vmatmul.mubr.msk.bf16.gmra.mrb[4].mxu1 %vm125_vm1, %v455_v9  ;;  %v348_v56 = vld [vmem:[%s693_s3 + $0x58] sm:$0xff]  ;;  %v346_v62 = vld [vmem:[%s693_s3 + $0x48] sm:$0xff] }
  0xd9   :  { %v429_v12 = vpop.f32.mrb[0].mxu0  ;;  %v437_v13 = vpop.f32.mrb[0].mxu1 }
  0xda   :  { %vm253_vm3 = vcmp.eq.f32.partialorder %v429_v12, 4.0  ;;  %v188_v14 = vpop.f32.mrb[1].mxu0  ;;  %vm261_vm4 = vcmp.eq.f32.partialorder %v437_v13, 4.0  ;;  %v220_v15 = vpop.f32.mrb[1].mxu1 }
  0xdb   :  { %v430_v16 = vpop.f32.mrb[2].mxu0  ;;  %v275_v17 = vsel %vm253_vm3, %v415_v11, 0.0  ;;  %v438_v18 = vpop.f32.mrb[2].mxu1  ;;  %v283_v19 = vsel %vm261_vm4, %v415_v11, 0.0  ;;  %vm251_vm6 = vcmp.eq.f32.partialorder %v188_v14, 4.0  ;;  %vm259_vm8 = vcmp.eq.f32.partialorder %v220_v15, 4.0 }
  0xdc   :  { %vm254_vm5 = vcmp.eq.f32.partialorder %v430_v16, 4.0  ;;  %293 = vadd.xlane.f32.xlu1 %v275_v17  ;;  %v191_v20 = vpop.f32.mrb[3].mxu0  ;;  %309 = vadd.xlane.f32.xlu0 %v283_v19  ;;  %v223_v21 = vpop.f32.mrb[3].mxu1  ;;  %vm262_vm7 = vcmp.eq.f32.partialorder %v438_v18, 4.0  ;;  %v273_v23 = vsel %vm251_vm6, %v415_v11, 0.0  ;;  %v281_v30 = vsel %vm259_vm8, %v415_v11, 0.0 }
  0xdd   :  { %v276_v22 = vsel %vm254_vm5, %v415_v11, 0.0  ;;  %v284_v27 = vsel %vm262_vm7, %v415_v11, 0.0  ;;  %vm260_vm9 = vcmp.eq.f32.partialorder %v223_v21, 4.0  ;;  %vm252_vm10 = vcmp.eq.f32.partialorder %v191_v20, 4.0  ;;  %v350_v16 = vld [vmem:[%s693_s3 + $0x68] sm:$0xff]  ;;  %v349_v17 = vld [vmem:[%s693_s3 + $0x60] sm:$0xff] }
  0xde   :  { %v282_v34 = vsel %vm260_vm9, %v415_v11, 0.0  ;;  %v274_v35 = vsel %vm252_vm10, %v415_v11, 0.0 }
  0xe0   :  { %295 = vadd.xlane.f32.xlu1 %v276_v22  ;;  %289 = vadd.xlane.f32.xlu0 %v273_v23  ;;  %v352_v22 = vld [vmem:[%s693_s3 + $0x78] sm:$0xff]  ;;  %v351_v23 = vld [vmem:[%s693_s3 + $0x70] sm:$0xff] }
  0xe1   :  { %v433_v24 = vpop.f32.mrb[4].mxu0  ;;  %v441_v26 = vpop.f32.mrb[4].mxu1 }
  0xe2   :  { %v204_v25 = vpop.f32.mrb[5].mxu0  ;;  %v236_v29 = vpop.f32.mrb[5].mxu1  ;;  %vm257_vm12 = vcmp.eq.f32.partialorder %v433_v24, 4.0  ;;  %vm265_vm3 = vcmp.eq.f32.partialorder %v441_v26, 4.0 }
  0xe3   :  { %v434_v28 = vpop.f32.mrb[6].mxu0  ;;  %v442_v32 = vpop.f32.mrb[6].mxu1  ;;  %v279_v37 = vsel %vm257_vm12, %v415_v11, 0.0  ;;  %vm255_vm14 = vcmp.eq.f32.partialorder %v204_v25, 4.0  ;;  %vm263_vm0 = vcmp.eq.f32.partialorder %v236_v29, 4.0  ;;  %v287_v43 = vsel %vm265_vm3, %v415_v11, 0.0 }
  0xe4   :  { %311 = vadd.xlane.f32.xlu1 %v284_v27  ;;  %v207_v31 = vpop.f32.mrb[7].mxu0  ;;  %305 = vadd.xlane.f32.xlu0 %v281_v30  ;;  %v239_v33 = vpop.f32.mrb[7].mxu1  ;;  %vm258_vm11 = vcmp.eq.f32.partialorder %v434_v28, 4.0  ;;  %v277_v39 = vsel %vm255_vm14, %v415_v11, 0.0  ;;  %vm266_vm1 = vcmp.eq.f32.partialorder %v442_v32, 4.0  ;;  %v285_v41 = vsel %vm263_vm0, %v415_v11, 0.0 }
  0xe5   :  { %v280_v36 = vsel %vm258_vm11, %v415_v11, 0.0  ;;  %vm256_vm13 = vcmp.eq.f32.partialorder %v207_v31, 4.0  ;;  %vm264_vm15 = vcmp.eq.f32.partialorder %v239_v33, 4.0  ;;  %v288_v42 = vsel %vm266_vm1, %v415_v11, 0.0 }
  0xe6   :  { %v278_v38 = vsel %vm256_vm13, %v415_v11, 0.0  ;;  %v286_v40 = vsel %vm264_vm15, %v415_v11, 0.0  ;;  %v341_v11 = vld [vmem:[%s693_s3 + $0x20] sm:$0xff] }
  0xe8   :  { %307 = vadd.xlane.f32.xlu1 %v282_v34  ;;  %291 = vadd.xlane.f32.xlu0 %v274_v35 }
  0xec   :  { %303 = vadd.xlane.f32.xlu1 %v280_v36  ;;  %301 = vadd.xlane.f32.xlu0 %v279_v37 }
  0xf0   :  { %299 = vadd.xlane.f32.xlu1 %v278_v38  ;;  %297 = vadd.xlane.f32.xlu0 %v277_v39 }
  0xf4   :  { %315 = vadd.xlane.f32.xlu1 %v286_v40  ;;  %313 = vadd.xlane.f32.xlu0 %v285_v41 }
  0xf8   :  { %319 = vadd.xlane.f32.xlu1 %v288_v42  ;;  %317 = vadd.xlane.f32.xlu0 %v287_v43 }
 0x169   :  { %v294_v46 = vpop.xlane.xlu1 %293  ;;  %v310_v47 = vpop.xlane.xlu0 %309 }
 0x16a   :  { %v355_v48 = vadd.f32 %v339_v44, %v294_v46  ;;  %v363_v49 = vadd.f32 %v347_v45, %v310_v47 }
 0x16c   :  { %372 = vst.msk [vmem:[%s693_s3 + $0x10] sm:$0xff] %vm50_vm2, %v355_v48  ;;  %380 = vst.msk [vmem:[%s693_s3 + $0x50] sm:$0xff] %vm50_vm2, %v363_v49 }
 0x16d   :  { %v296_v52 = vpop.xlane.xlu1 %295  ;;  %v290_v53 = vpop.xlane.xlu0 %289 }
 0x16e   :  { %v356_v54 = vadd.f32 %v340_v50, %v296_v52  ;;  %v353_v55 = vadd.f32 %v337_v51, %v290_v53 }
 0x170   :  { %373 = vst.msk [vmem:[%s693_s3 + $0x18] sm:$0xff] %vm50_vm2, %v356_v54  ;;  %370 = vst.msk [vmem:[%s693_s3] sm:$0xff] %vm50_vm2, %v353_v55 }
 0x171   :  { %v312_v58 = vpop.xlane.xlu1 %311  ;;  %v306_v59 = vpop.xlane.xlu0 %305 }
 0x172   :  { %v364_v60 = vadd.f32 %v348_v56, %v312_v58  ;;  %v361_v61 = vadd.f32 %v345_v57, %v306_v59 }
 0x174   :  { %381 = vst.msk [vmem:[%s693_s3 + $0x58] sm:$0xff] %vm50_vm2, %v364_v60  ;;  %378 = vst.msk [vmem:[%s693_s3 + $0x40] sm:$0xff] %vm50_vm2, %v361_v61 }
 0x175   :  { %v308_v0 = vpop.xlane.xlu1 %307  ;;  %v292_v2 = vpop.xlane.xlu0 %291 }
 0x176   :  { %v362_v1 = vadd.f32 %v346_v62, %v308_v0  ;;  %v354_v3 = vadd.f32 %v338_v63, %v292_v2 }
 0x178   :  { %379 = vst.msk [vmem:[%s693_s3 + $0x48] sm:$0xff] %vm50_vm2, %v362_v1  ;;  %371 = vst.msk [vmem:[%s693_s3 + $0x8] sm:$0xff] %vm50_vm2, %v354_v3 }
 0x179   :  { %v304_v6 = vpop.xlane.xlu1 %303  ;;  %v302_v7 = vpop.xlane.xlu0 %301 }
 0x17a   :  { %v360_v8 = vadd.f32 %v344_v4, %v304_v6  ;;  %v359_v9 = vadd.f32 %v343_v5, %v302_v7 }
 0x17c   :  { %377 = vst.msk [vmem:[%s693_s3 + $0x38] sm:$0xff] %vm50_vm2, %v360_v8  ;;  %376 = vst.msk [vmem:[%s693_s3 + $0x30] sm:$0xff] %vm50_vm2, %v359_v9 }
 0x17d   :  { %v300_v12 = vpop.xlane.xlu1 %299  ;;  %v298_v13 = vpop.xlane.xlu0 %297 }
 0x17e   :  { %v358_v14 = vadd.f32 %v342_v10, %v300_v12  ;;  %v357_v15 = vadd.f32 %v341_v11, %v298_v13 }
 0x180   :  { %375 = vst.msk [vmem:[%s693_s3 + $0x28] sm:$0xff] %vm50_vm2, %v358_v14  ;;  %374 = vst.msk [vmem:[%s693_s3 + $0x20] sm:$0xff] %vm50_vm2, %v357_v15 }
 0x181   :  { %v316_v18 = vpop.xlane.xlu1 %315  ;;  %v314_v19 = vpop.xlane.xlu0 %313 }
 0x182   :  { %v366_v20 = vadd.f32 %v350_v16, %v316_v18  ;;  %v365_v21 = vadd.f32 %v349_v17, %v314_v19 }
 0x184   :  { %383 = vst.msk [vmem:[%s693_s3 + $0x68] sm:$0xff] %vm50_vm2, %v366_v20  ;;  %382 = vst.msk [vmem:[%s693_s3 + $0x60] sm:$0xff] %vm50_vm2, %v365_v21 }
 0x185   :  { %v320_v24 = vpop.xlane.xlu1 %319  ;;  %v318_v25 = vpop.xlane.xlu0 %317 }
 0x186   :  { %v368_v26 = vadd.f32 %v352_v22, %v320_v24  ;;  %v367_v27 = vadd.f32 %v351_v23, %v318_v25 }
 0x188   :  { %385 = vst.msk [vmem:[%s693_s3 + $0x78] sm:$0xff] %vm50_vm2, %v368_v26  ;;  %384 = vst.msk [vmem:[%s693_s3 + $0x70] sm:$0xff] %vm50_vm2, %v367_v27 }

</bundles_post_ra>
